<compile_context>
chip_gen: v6e
topology: v6e:2x2x1
jax: 0.10.0
libtpu: 0.0.40
codegen_flags: <defaults>
</compile_context>

<pallas_src>
import functools

import jax
import jax.numpy as jnp
from jax.experimental import pallas as pl
from jax.experimental.pallas import tpu as pltpu


def _mha_kernel(x_ref, wqkv_ref, wo_ref, o_ref, *, head_num, scale):
    # x_ref: (1, S, E); wqkv_ref: (E, 3E); wo_ref: (E, E); o_ref: (1, S, E)
    cdt = x_ref.dtype                       # MXU input dtype (f32 or bf16)
    x = x_ref[0]                            # (S, E)
    E = x.shape[-1]
    D = E // head_num

    # Full-width QKV projection: single (S,E)@(E,3E) matmul, f32 accumulation.
    qkv = jnp.dot(x, wqkv_ref[...], preferred_element_type=jnp.float32)   # (S, 3E) f32

    ctx_parts = []
    for h in range(head_num):               # static unroll; head_num is small
        # Fold the sqrt(D) scale into q (the reference *multiplies* by sqrt(D)).
        q = (qkv[:, h * D:(h + 1) * D] * scale).astype(cdt)               # (S, D)
        k = qkv[:, E + h * D:E + (h + 1) * D].astype(cdt)                 # (S, D)
        v = qkv[:, 2 * E + h * D:2 * E + (h + 1) * D].astype(cdt)         # (S, D)

        # energy = (q * sqrt(D)) @ k^T
        energy = jax.lax.dot_general(
            q, k, (((1,), (1,)), ((), ())),
            preferred_element_type=jnp.float32)                           # (S, S) f32

        # TODO(synk): optional mask (energy.masked_fill(mask, -inf)) not
        # implemented; the TransUNet forward path always calls with mask=None.
        m = jnp.max(energy, axis=-1, keepdims=True)
        p = jnp.exp(energy - m)                                           # unnormalized probs
        # Deferred normalization: scale the (S,D) context, not the (S,S) probs.
        inv_l = pl.reciprocal(jnp.sum(p, axis=-1, keepdims=True), approx=True)
        ctx = jnp.dot(p.astype(cdt), v, preferred_element_type=jnp.float32)  # (S, D) f32
        ctx_parts.append((ctx * inv_l).astype(cdt))

    ctx_full = jnp.concatenate(ctx_parts, axis=-1)                        # (S, E)
    # Single full-width output projection: (S,E)@(E,E), K=E fills the MXU.
    out = jnp.dot(ctx_full, wo_ref[...], preferred_element_type=jnp.float32)
    o_ref[0] = out.astype(o_ref.dtype)


def prepare_weights(w_qkv, w_out, head_num):
    """One-time layout plumbing: call at model init, NOT per forward.

    Permutes the PyTorch qkv weight (3E, E) into an (E, 3E) slab whose output
    columns are ordered [q_h0..q_h(H-1) | k_... | v_...] with d minor, which
    reproduces rearrange(qkv, 'b t (d k h) -> k b h t d').  The concat order in
    the kernel (head-major, d-minor) then matches 'b h t d -> b t (h d)', so
    W_out only needs a transpose.
    """
    three_e, E = w_qkv.shape
    assert three_e == 3 * E and E % head_num == 0
    D = E // head_num
    # PyTorch qkv output-column index for (kk, h, d) under 'b t (d k h)':
    rows = (jnp.arange(D)[None, None, :] * (3 * head_num)
            + jnp.arange(3)[:, None, None] * head_num
            + jnp.arange(head_num)[None, :, None])            # (3, H, D)
    wqkv_slab = w_qkv[rows.reshape(-1)].T                      # (E, 3E): col = kk*E + h*D + d
    wo_slab = w_out.T                                          # (E, E)
    return wqkv_slab, wo_slab


@functools.partial(jax.jit, static_argnames=("head_num",))
def multi_head_attention(x, wqkv_slab, wo_slab, *, head_num):
    """x: (B, S, E); wqkv_slab: (E, 3E); wo_slab: (E, E) (from prepare_weights)."""
    B, S, E = x.shape
    assert E % head_num == 0, "embedding_dim must be divisible by head_num"
    D = E // head_num
    scale = float(D) ** 0.5            # reference multiplies by sqrt(head_dim)

    kernel = functools.partial(_mha_kernel, head_num=head_num, scale=scale)

    return pl.pallas_call(
        kernel,
        out_shape=jax.ShapeDtypeStruct((B, S, E), x.dtype),
        grid_spec=pltpu.PrefetchScalarGridSpec(
            num_scalar_prefetch=0,
            grid=(B,),                 # batch rows, sharded across TensorCores
            in_specs=[
                pl.BlockSpec((1, S, E), lambda b: (b, 0, 0)),      # x row
                pl.BlockSpec((E, 3 * E), lambda b: (0, 0)),        # QKV slab (not re-DMA'd)
                pl.BlockSpec((E, E), lambda b: (0, 0)),            # W_out^T (not re-DMA'd)
            ],
            out_specs=pl.BlockSpec((1, S, E), lambda b: (b, 0, 0)),
        ),
        compiler_params=pltpu.CompilerParams(
            dimension_semantics=("parallel",),
        ),
    )(x, wqkv_slab, wo_slab)


def _reference(x, w_qkv, w_out, head_num):
    """Plain-JAX transcription of the PyTorch forward (mask=None)."""
    B, S, E = x.shape
    D = E // head_num
    scale = float(D) ** 0.5
    qkv = x @ w_qkv.T                                   # (B, S, 3E)
    qkv = qkv.reshape(B, S, D, 3, head_num)             # 'b t (d k h)'
    qkv = jnp.transpose(qkv, (3, 0, 4, 1, 2))           # 'k b h t d'
    q, k, v = qkv[0], qkv[1], qkv[2]
    energy = jnp.einsum("bhid,bhjd->bhij", q, k) * scale
    attn = jax.nn.softmax(energy, axis=-1)
    ctx = jnp.einsum("bhij,bhjd->bhid", attn, v)
    ctx = jnp.transpose(ctx, (0, 2, 1, 3)).reshape(B, S, E)
    return ctx @ w_out.T


if __name__ == "__main__":
    key = jax.random.PRNGKey(0)
    kx, kq, ko = jax.random.split(key, 3)

    # Small shapes; E = 128 keeps the output tiles lane-dense (multiple of 128).
    B, S, E, heads = 2, 16, 128, 4

    x = jax.random.normal(kx, (B, S, E), dtype=jnp.float32)
    lim = 1.0 / (E ** 0.5)   # nn.Linear default uniform(-1/sqrt(in), 1/sqrt(in))
    w_qkv = jax.random.uniform(kq, (3 * E, E), jnp.float32, -lim, lim)
    w_out = jax.random.uniform(ko, (E, E), jnp.float32, -lim, lim)

    # One-time weight preparation (hoisted out of the per-call path).
    wqkv_slab, wo_slab = prepare_weights(w_qkv, w_out, heads)
    wqkv_slab = jax.block_until_ready(wqkv_slab)
    wo_slab = jax.block_until_ready(wo_slab)

    out = multi_head_attention(x, wqkv_slab, wo_slab, head_num=heads)
    out = jax.block_until_ready(out)

    ref = _reference(x, w_qkv, w_out, heads)
    assert out.shape == (B, S, E)
    err = float(jnp.max(jnp.abs(out - ref)))
    # Tolerance accounts for the EUP approximate reciprocal in the deferred
    # softmax normalization; structural bugs would be orders of magnitude larger.
    assert jnp.allclose(out, ref, atol=5e-3, rtol=5e-3), f"mismatch vs reference, max err {err}"

    # bf16 inputs/weights -> bf16 MXU path with f32 accumulation; tolerance
    # check against the f32 reference (bf16 rounding dominates the error).
    out_bf16 = multi_head_attention(
        x.astype(jnp.bfloat16), wqkv_slab.astype(jnp.bfloat16),
        wo_slab.astype(jnp.bfloat16), head_num=heads)
    out_bf16 = jax.block_until_ready(out_bf16)
    assert out_bf16.shape == (B, S, E)
    err_bf16 = float(jnp.max(jnp.abs(out_bf16.astype(jnp.float32) - ref)))
    assert jnp.allclose(out_bf16.astype(jnp.float32), ref, atol=5e-2, rtol=5e-2), \
        f"bf16 mismatch vs reference, max err {err_bf16}"

    print("KERNEL_OK")
</pallas_src>

<mosaic_0001>
module attributes {stable_mosaic.version = 11 : i64} {
  func.func @_mha_kernel(%arg0: i32, %arg1: memref<1x16x128xf32, #tpu.memory_space<vmem>>, %arg2: memref<128x384xf32, #tpu.memory_space<vmem>>, %arg3: memref<128x128xf32, #tpu.memory_space<vmem>>, %arg4: memref<1x16x128xf32, #tpu.memory_space<vmem>>) attributes {dimension_semantics = [#tpu.dimension_semantics<parallel>], iteration_bounds = array<i64: 2>, scalar_prefetch = 0 : i64, scratch_operands = 0 : i64, tpu.core_type = #tpu.core_type<tc>, window_params = [{transform_indices = @transform_0, window_bounds = array<i64: 1, 16, 128>}, {pipeline_mode = #tpu.pipeline_mode<synchronous>, transform_indices = @transform_1, window_bounds = array<i64: 128, 384>}, {pipeline_mode = #tpu.pipeline_mode<synchronous>, transform_indices = @transform_2, window_bounds = array<i64: 128, 128>}, {transform_indices = @transform_3, window_bounds = array<i64: 1, 16, 128>}]} {
    %c0 = arith.constant 0 : index
    %c0_0 = arith.constant 0 : index
    %c0_1 = arith.constant 0 : index
    %0 = vector.load %arg1[%c0, %c0_0, %c0_1] : memref<1x16x128xf32, #tpu.memory_space<vmem>>, vector<1x16x128xf32>
    %1 = vector.shape_cast %0 : vector<1x16x128xf32> to vector<16x128xf32>
    %c0_2 = arith.constant 0 : index
    %c0_3 = arith.constant 0 : index
    %2 = vector.load %arg2[%c0_2, %c0_3] : memref<128x384xf32, #tpu.memory_space<vmem>>, vector<128x384xf32>
    %cst = arith.constant dense<0.000000e+00> : vector<16x384xf32>
    %3 = tpu.matmul %1, %2, %cst {dimension_numbers = #tpu.dot_dimension_numbers<[1], [0], [0], [1], [0, 0, 1, 1], [], []>} : vector<16x128xf32>, vector<128x384xf32>, vector<16x384xf32> -> vector<16x384xf32>
    %4 = vector.extract_strided_slice %3 {offsets = [0, 0], sizes = [16, 32], strides = [1, 1]} : vector<16x384xf32> to vector<16x32xf32>
    %cst_4 = arith.constant 5.65685415 : f32
    %5 = vector.broadcast %cst_4 : f32 to vector<16x32xf32>
    %6 = arith.mulf %4, %5 : vector<16x32xf32>
    %7 = vector.extract_strided_slice %3 {offsets = [0, 128], sizes = [16, 32], strides = [1, 1]} : vector<16x384xf32> to vector<16x32xf32>
    %8 = vector.extract_strided_slice %3 {offsets = [0, 256], sizes = [16, 32], strides = [1, 1]} : vector<16x384xf32> to vector<16x32xf32>
    %cst_5 = arith.constant dense<0.000000e+00> : vector<16x16xf32>
    %9 = tpu.matmul %6, %7, %cst_5 {dimension_numbers = #tpu.dot_dimension_numbers<[1], [1], [0], [0], [0, 0, 1, 0], [], []>} : vector<16x32xf32>, vector<16x32xf32>, vector<16x16xf32> -> vector<16x16xf32>
    %cst_6 = arith.constant dense<0xFF800000> : vector<16xf32>
    %10 = vector.multi_reduction <maximumf>, %9, %cst_6 [1] : vector<16x16xf32> to vector<16xf32>
    %11 = vector.shape_cast %10 : vector<16xf32> to vector<16x1xf32>
    %12 = vector.broadcast %11 : vector<16x1xf32> to vector<16x16xf32>
    %13 = arith.subf %9, %12 : vector<16x16xf32>
    %14 = math.exp %13 : vector<16x16xf32>
    %cst_7 = arith.constant dense<0.000000e+00> : vector<16xf32>
    %15 = vector.multi_reduction <add>, %14, %cst_7 [1] : vector<16x16xf32> to vector<16xf32>
    %16 = vector.shape_cast %15 : vector<16xf32> to vector<16x1xf32>
    %17 = tpu.reciprocal %16 {approx = true} : vector<16x1xf32> -> vector<16x1xf32>
    %cst_8 = arith.constant dense<0.000000e+00> : vector<16x32xf32>
    %18 = tpu.matmul %14, %8, %cst_8 {dimension_numbers = #tpu.dot_dimension_numbers<[1], [0], [0], [1], [0, 0, 1, 1], [], []>} : vector<16x16xf32>, vector<16x32xf32>, vector<16x32xf32> -> vector<16x32xf32>
    %19 = vector.broadcast %17 : vector<16x1xf32> to vector<16x32xf32>
    %20 = arith.mulf %18, %19 : vector<16x32xf32>
    %21 = vector.extract_strided_slice %3 {offsets = [0, 32], sizes = [16, 32], strides = [1, 1]} : vector<16x384xf32> to vector<16x32xf32>
    %cst_9 = arith.constant 5.65685415 : f32
    %22 = vector.broadcast %cst_9 : f32 to vector<16x32xf32>
    %23 = arith.mulf %21, %22 : vector<16x32xf32>
    %24 = vector.extract_strided_slice %3 {offsets = [0, 160], sizes = [16, 32], strides = [1, 1]} : vector<16x384xf32> to vector<16x32xf32>
    %25 = vector.extract_strided_slice %3 {offsets = [0, 288], sizes = [16, 32], strides = [1, 1]} : vector<16x384xf32> to vector<16x32xf32>
    %cst_10 = arith.constant dense<0.000000e+00> : vector<16x16xf32>
    %26 = tpu.matmul %23, %24, %cst_10 {dimension_numbers = #tpu.dot_dimension_numbers<[1], [1], [0], [0], [0, 0, 1, 0], [], []>} : vector<16x32xf32>, vector<16x32xf32>, vector<16x16xf32> -> vector<16x16xf32>
    %cst_11 = arith.constant dense<0xFF800000> : vector<16xf32>
    %27 = vector.multi_reduction <maximumf>, %26, %cst_11 [1] : vector<16x16xf32> to vector<16xf32>
    %28 = vector.shape_cast %27 : vector<16xf32> to vector<16x1xf32>
    %29 = vector.broadcast %28 : vector<16x1xf32> to vector<16x16xf32>
    %30 = arith.subf %26, %29 : vector<16x16xf32>
    %31 = math.exp %30 : vector<16x16xf32>
    %cst_12 = arith.constant dense<0.000000e+00> : vector<16xf32>
    %32 = vector.multi_reduction <add>, %31, %cst_12 [1] : vector<16x16xf32> to vector<16xf32>
    %33 = vector.shape_cast %32 : vector<16xf32> to vector<16x1xf32>
    %34 = tpu.reciprocal %33 {approx = true} : vector<16x1xf32> -> vector<16x1xf32>
    %cst_13 = arith.constant dense<0.000000e+00> : vector<16x32xf32>
    %35 = tpu.matmul %31, %25, %cst_13 {dimension_numbers = #tpu.dot_dimension_numbers<[1], [0], [0], [1], [0, 0, 1, 1], [], []>} : vector<16x16xf32>, vector<16x32xf32>, vector<16x32xf32> -> vector<16x32xf32>
    %36 = vector.broadcast %34 : vector<16x1xf32> to vector<16x32xf32>
    %37 = arith.mulf %35, %36 : vector<16x32xf32>
    %38 = vector.extract_strided_slice %3 {offsets = [0, 64], sizes = [16, 32], strides = [1, 1]} : vector<16x384xf32> to vector<16x32xf32>
    %cst_14 = arith.constant 5.65685415 : f32
    %39 = vector.broadcast %cst_14 : f32 to vector<16x32xf32>
    %40 = arith.mulf %38, %39 : vector<16x32xf32>
    %41 = vector.extract_strided_slice %3 {offsets = [0, 192], sizes = [16, 32], strides = [1, 1]} : vector<16x384xf32> to vector<16x32xf32>
    %42 = vector.extract_strided_slice %3 {offsets = [0, 320], sizes = [16, 32], strides = [1, 1]} : vector<16x384xf32> to vector<16x32xf32>
    %cst_15 = arith.constant dense<0.000000e+00> : vector<16x16xf32>
    %43 = tpu.matmul %40, %41, %cst_15 {dimension_numbers = #tpu.dot_dimension_numbers<[1], [1], [0], [0], [0, 0, 1, 0], [], []>} : vector<16x32xf32>, vector<16x32xf32>, vector<16x16xf32> -> vector<16x16xf32>
    %cst_16 = arith.constant dense<0xFF800000> : vector<16xf32>
    %44 = vector.multi_reduction <maximumf>, %43, %cst_16 [1] : vector<16x16xf32> to vector<16xf32>
    %45 = vector.shape_cast %44 : vector<16xf32> to vector<16x1xf32>
    %46 = vector.broadcast %45 : vector<16x1xf32> to vector<16x16xf32>
    %47 = arith.subf %43, %46 : vector<16x16xf32>
    %48 = math.exp %47 : vector<16x16xf32>
    %cst_17 = arith.constant dense<0.000000e+00> : vector<16xf32>
    %49 = vector.multi_reduction <add>, %48, %cst_17 [1] : vector<16x16xf32> to vector<16xf32>
    %50 = vector.shape_cast %49 : vector<16xf32> to vector<16x1xf32>
    %51 = tpu.reciprocal %50 {approx = true} : vector<16x1xf32> -> vector<16x1xf32>
    %cst_18 = arith.constant dense<0.000000e+00> : vector<16x32xf32>
    %52 = tpu.matmul %48, %42, %cst_18 {dimension_numbers = #tpu.dot_dimension_numbers<[1], [0], [0], [1], [0, 0, 1, 1], [], []>} : vector<16x16xf32>, vector<16x32xf32>, vector<16x32xf32> -> vector<16x32xf32>
    %53 = vector.broadcast %51 : vector<16x1xf32> to vector<16x32xf32>
    %54 = arith.mulf %52, %53 : vector<16x32xf32>
    %55 = vector.extract_strided_slice %3 {offsets = [0, 96], sizes = [16, 32], strides = [1, 1]} : vector<16x384xf32> to vector<16x32xf32>
    %cst_19 = arith.constant 5.65685415 : f32
    %56 = vector.broadcast %cst_19 : f32 to vector<16x32xf32>
    %57 = arith.mulf %55, %56 : vector<16x32xf32>
    %58 = vector.extract_strided_slice %3 {offsets = [0, 224], sizes = [16, 32], strides = [1, 1]} : vector<16x384xf32> to vector<16x32xf32>
    %59 = vector.extract_strided_slice %3 {offsets = [0, 352], sizes = [16, 32], strides = [1, 1]} : vector<16x384xf32> to vector<16x32xf32>
    %cst_20 = arith.constant dense<0.000000e+00> : vector<16x16xf32>
    %60 = tpu.matmul %57, %58, %cst_20 {dimension_numbers = #tpu.dot_dimension_numbers<[1], [1], [0], [0], [0, 0, 1, 0], [], []>} : vector<16x32xf32>, vector<16x32xf32>, vector<16x16xf32> -> vector<16x16xf32>
    %cst_21 = arith.constant dense<0xFF800000> : vector<16xf32>
    %61 = vector.multi_reduction <maximumf>, %60, %cst_21 [1] : vector<16x16xf32> to vector<16xf32>
    %62 = vector.shape_cast %61 : vector<16xf32> to vector<16x1xf32>
    %63 = vector.broadcast %62 : vector<16x1xf32> to vector<16x16xf32>
    %64 = arith.subf %60, %63 : vector<16x16xf32>
    %65 = math.exp %64 : vector<16x16xf32>
    %cst_22 = arith.constant dense<0.000000e+00> : vector<16xf32>
    %66 = vector.multi_reduction <add>, %65, %cst_22 [1] : vector<16x16xf32> to vector<16xf32>
    %67 = vector.shape_cast %66 : vector<16xf32> to vector<16x1xf32>
    %68 = tpu.reciprocal %67 {approx = true} : vector<16x1xf32> -> vector<16x1xf32>
    %cst_23 = arith.constant dense<0.000000e+00> : vector<16x32xf32>
    %69 = tpu.matmul %65, %59, %cst_23 {dimension_numbers = #tpu.dot_dimension_numbers<[1], [0], [0], [1], [0, 0, 1, 1], [], []>} : vector<16x16xf32>, vector<16x32xf32>, vector<16x32xf32> -> vector<16x32xf32>
    %70 = vector.broadcast %68 : vector<16x1xf32> to vector<16x32xf32>
    %71 = arith.mulf %69, %70 : vector<16x32xf32>
    %72 = tpu.concatenate %20, %37, %54, %71 in 1 : vector<16x32xf32>, vector<16x32xf32>, vector<16x32xf32>, vector<16x32xf32> -> vector<16x128xf32>
    %c0_24 = arith.constant 0 : index
    %c0_25 = arith.constant 0 : index
    %73 = vector.load %arg3[%c0_24, %c0_25] : memref<128x128xf32, #tpu.memory_space<vmem>>, vector<128x128xf32>
    %cst_26 = arith.constant dense<0.000000e+00> : vector<16x128xf32>
    %74 = tpu.matmul %72, %73, %cst_26 {dimension_numbers = #tpu.dot_dimension_numbers<[1], [0], [0], [1], [0, 0, 1, 1], [], []>} : vector<16x128xf32>, vector<128x128xf32>, vector<16x128xf32> -> vector<16x128xf32>
    %c0_27 = arith.constant 0 : index
    %c0_28 = arith.constant 0 : index
    %c0_29 = arith.constant 0 : index
    %75 = vector.load %arg4[%c0_27, %c0_28, %c0_29] : memref<1x16x128xf32, #tpu.memory_space<vmem>>, vector<1x16x128xf32>
    %76 = vector.shape_cast %75 : vector<1x16x128xf32> to vector<16x128xf32>
    %77 = vector.shape_cast %74 : vector<16x128xf32> to vector<1x16x128xf32>
    tpu.vector_store %arg4[%c0_27, %c0_28, %c0_29], %77 {strides = array<i32>} : memref<1x16x128xf32, #tpu.memory_space<vmem>>, vector<1x16x128xf32>,
    return
  }
  func.func @transform_0(%arg0: i32) -> (i32, i32, i32) {
    %c0_i32 = arith.constant 0 : i32
    %c0_i32_0 = arith.constant 0 : i32
    %c0_i32_1 = arith.constant 0 : i32
    return %arg0, %c0_i32, %c0_i32_0 : i32, i32, i32
  }
  func.func @transform_1(%arg0: i32) -> (i32, i32) {
    %c0_i32 = arith.constant 0 : i32
    %c0_i32_0 = arith.constant 0 : i32
    %c0_i32_1 = arith.constant 0 : i32
    return %c0_i32, %c0_i32_0 : i32, i32
  }
  func.func @transform_2(%arg0: i32) -> (i32, i32) {
    %c0_i32 = arith.constant 0 : i32
    %c0_i32_0 = arith.constant 0 : i32
    %c0_i32_1 = arith.constant 0 : i32
    return %c0_i32, %c0_i32_0 : i32, i32
  }
  func.func @transform_3(%arg0: i32) -> (i32, i32, i32) {
    %c0_i32 = arith.constant 0 : i32
    %c0_i32_0 = arith.constant 0 : i32
    %c0_i32_1 = arith.constant 0 : i32
    return %arg0, %c0_i32, %c0_i32_0 : i32, i32, i32
  }
}

</mosaic_0001>

<bundles_post_ra>
// kernel: multi_head_attention.1
= control target key start
LH: loop header
LB: loop body
LE: loop exit
PB: predicated region body
PF: predicated region fallthrough
CT: control target
= control target key end

     0   :  { %8 = vsyncpa [#allocation3], 0  ;;  %s2329_s0 = inlined_call_operand.hbm [shape: f32[2,16,128], index: 0, kind: input, shape index: {}]   ;;  %s2330_s1 = inlined_call_operand.hbm [shape: f32[128,384], index: 1, kind: input, shape index: {}]   ;;  %s2331_s2 = inlined_call_operand.hbm [shape: f32[128,128], index: 2, kind: input, shape index: {}]   ;;  %s2332_s3 = inlined_call_operand.hbm [shape: f32[2,16,128], index: 3, kind: output, shape index: {}]  }
   0x1   :  { %10 = vsyncpa [#allocation3 + $0x1], 0 }
   0x2   :  { %11 = vsyncpa [#allocation6], 0 }
   0x3   :  { %12 = vsyncpa [#allocation4], 0 }
   0x4   :  { %14 = vsyncpa [#allocation4 + $0x1], 0  ;;  %s1993_s12 = smov 0   ;;  %s1995_s13 = smov 0  }
   0x5   :  { %s1997_s14 = smov 0   ;;  %s1999_s15 = smov 0  }
   0x6 LB: > { %s2014_s16 = sadd.s32 4294967295, %s1957_s15   ;;  %s1447_s17 = sadd.s32 4294967294, %s1957_s15   ;;  %s1957_s15 = sphi %s1999_s15, %s2354_s15   ;;  %s1953_s14 = sphi %s1997_s14, %s2353_s14   ;;  %s1949_s13 = sphi %s1995_s13, %s2352_s13   ;;  %s1945_s12 = sphi %s1993_s12, %s2351_s12  }
   0x7   : > { %p40_p0 = scmp.ne.s32.totalorder %s1949_s13, %s1945_s12  ;;  %p2333_p1 = scmp.eq.s32.totalorder %s2014_s16, 0 }
   0x8   : > { %p112_p3 = scmp.eq.s32.totalorder %s1447_s17, 1  ;;  %p1448_p5 = scmp.ge.s32.totalorder %s1957_s15, 1 }
   0x9   : > { %p2023_p4 = por %p2333_p1, %p40_p0  ;;  %p119_p7 = scmp.lt.s32.totalorder %s1957_s15, 3 }
   0xa   : > { %p2028_p6 = por %p112_p3, %p40_p0  ;;  %s1959_s21 = smov [#allocation5]  }
   0xb   : > { %s2337_s18 = scalar_select %p2023_p4, 1, 0 }
   0xc   : > { %s2338_s19 = scalar_select %p2028_p6, 1, 0 }
   0xd   : > { %p2033_p8 = pnand %p1448_p5, %p119_p7  ;;  %s131_s22 = sshll.u32 %s1959_s21, 4  ;;  %s132_s22 = int_to_ptr.vmem [resolvable:$true] %s131_s22 }
   0xe   : > { %s1960_s24 = smov [#allocation7]   ;;  %s1820_s26 = scalar_lea.vmem %s132_s22, 6144 }
   0xf   : > { %s2339_s20 = scalar_select %p2033_p8, 1, 0 }
  0x10   : > { %p1697_p9 = pneg %p2033_p8  ;;  %s144_s25 = sshll.u32 %s1960_s24, 4  ;;  %s145_s25 = int_to_ptr.vmem [resolvable:$true] %s144_s25 }
  0x11   : > { %p1821_p13 = scmp.ne.s32.totalorder %s132_s22, %s1820_s26  ;;  %p1828_p5 = scmp.lt.s32.totalorder %s132_s22, %s132_s22 }
  0x12   : > { %p2042_p11 = pnand %p1697_p9, %p2333_p1  ;;  %p1829_p7 = scmp.lt.s32.totalorder %s1820_s26, %s1820_s26 }
  0x14   : > { %p1811_p12 = pneg %p2042_p11  ;;  %p1830_p10 = por %p1829_p7, %p1828_p5 }
  0x16   : > { %p1823_p0 = pnand %p1821_p13, %p1811_p12 }
  0x18   : > { %p1824_p3 = pneg %p1823_p0 }
  0x1a   : > { %p1831_p9 = pnand %p1830_p10, %p1824_p3 }
  0x1c   : > { %1834 = shalt.err (!%p1831_p9)
}
  0x1d   : > { %s1961_s27 = smov 384   ;;  %s1962_s28 = smov 24  }
  0x1e   : > { %1700 = dma.hbm_to_vmem [thread:$0]  (!%p2042_p11), %s2330_s1, 6144, %s132_s22, [#allocation6], %s1961_s27, %s1961_s27, %s1962_s28  }
  0x1f   : > { %s1846_s4 = scalar_lea.vmem %s145_s25, 2048  ;;  %p1854_p2 = scmp.lt.s32.totalorder %s145_s25, %s145_s25 }
  0x20   : > { %p1847_p1 = scmp.ne.s32.totalorder %s145_s25, %s1846_s4  ;;  %p1855_p6 = scmp.lt.s32.totalorder %s1846_s4, %s1846_s4 }
  0x22   : > { %p1849_p13 = pnand %p1847_p1, %p1811_p12  ;;  %p1856_p5 = por %p1855_p6, %p1854_p2 }
  0x24   : > { %p1850_p0 = pneg %p1849_p13 }
  0x26   : > { %p1857_p10 = pnand %p1856_p5, %p1850_p0 }
  0x28   : > { %1860 = shalt.err (!%p1857_p10)
}
  0x29   : > { %s1963_s5 = smov 128   ;;  %s1964_s6 = smov 8  }
  0x2a   : > { %1703 = dma.hbm_to_vmem [thread:$0]  (!%p2042_p11), %s2331_s2, 2048, %s145_s25, [#allocation6], %s1963_s5, %s1963_s5, %s1964_s6  }
  0x2b   : > { %s2068_s9 = sadd.s32 1, %s1957_s15   ;;  %s27_s11 = sadd.s32 1, %s1953_s14 }
  0x2c   : > { %s24_s10 = ssub.s32 %s1957_s15, %s2068_s9  ;;  %p34_p2 = scmp.ne.s32.totalorder %s1953_s14, %s1949_s13 }
  0x2d   : > { %p25_p1 = scmp.eq.s32.totalorder %s24_s10, 0  ;;  %p35_p6 = scmp.eq.s32.totalorder %s1957_s15, 0 }
  0x2e   : > { %p2341_p3 = scmp.eq.s32.totalorder %s2014_s16, 1  ;;  %p1714_p9 = scmp.lt.s32.totalorder %s1957_s15, 2 }
  0x2f   : > { %s2077_s17 = scalar_select %p25_p1, %s1953_s14, %s27_s11  }
  0x30   : > { %p36_p12 = por %p35_p6, %p34_p2  ;;  %p2081_p7 = por %p2341_p3, %p34_p2 }
  0x31   : > { %s158_s22 = sand.u32 1, %s1953_s14   ;;  %s1489_s24 = sshll.u32 %s1957_s15, 8 }
  0x32   : > { %s2342_s21 = scalar_select %p2081_p7, 1, 0 }
  0x33   : > { %s1452_s23 = sshll.u32 %s158_s22, 4  ;;  %s2091_s27 = scalar_lea.hbm %s2329_s0, %s1489_s24 }
  0x34   : > { %s162_s28 = scalar_lea.vmem [#allocation2], %s1452_s23  ;;  %p2095_p11 = pnand %p1714_p9, %p36_p12 }
  0x35   : > { %s169_s29 = sshll.u32 %s162_s28, 4  ;;  %s2099_s4 = scalar_lea.sflag [#allocation3], %s158_s22  ;;  %s2093_s29 = int_to_ptr.vmem [resolvable:$true] %s169_s29 }
  0x36   : > { %s1861_s7 = scalar_lea.hbm %s2091_s27, 256  ;;  %p1863_p0 = pneg %p2095_p11 }
  0x37   : > { %p1862_p13 = scmp.ne.s32.totalorder %s2091_s27, %s1861_s7  ;;  %s1866_s11 = scalar_lea.hbm %s2329_s0, 512 }
  0x38   : > { %p1867_p1 = scmp.lt.s32.totalorder %s2091_s27, %s2329_s0  ;;  %p1868_p2 = scmp.lt.s32.totalorder %s1866_s11, %s1861_s7 }
  0x39   : > { %p1864_p5 = pnand %p1863_p0, %p1862_p13 }
  0x3a   : > { %p1869_p6 = por %p1868_p2, %p1867_p1 }
  0x3b   : > { %p1865_p10 = pneg %p1864_p5 }
  0x3d   : > { %p1870_p12 = pnand %p1869_p6, %p1865_p10 }
  0x3f   : > { %1873 = shalt.err (!%p1870_p12)
}
  0x40   : > { %s1874_s22 = scalar_lea.vmem %s2093_s29, 256  ;;  %s1965_s25 = smov [#allocation2]  }
  0x41   : > { %p1875_p3 = scmp.ne.s32.totalorder %s2093_s29, %s1874_s22  ;;  %s1879_s26 = sshll.u32 %s1965_s25, 4  ;;  %s1880_s26 = int_to_ptr.vmem [resolvable:$false] %s1879_s26 }
  0x42   : > { %s1881_s28 = scalar_lea.vmem %s1880_s26, 512  ;;  %p1882_p5 = scmp.lt.s32.totalorder %s2093_s29, %s1880_s26 }
  0x43   : > { %p1877_p9 = pnand %p1875_p3, %p1863_p0  ;;  %p1883_p7 = scmp.lt.s32.totalorder %s1881_s28, %s1874_s22 }
  0x45   : > { %p1878_p13 = pneg %p1877_p9  ;;  %p1884_p4 = por %p1883_p7, %p1882_p5 }
  0x47   : > { %p1885_p8 = pnand %p1884_p4, %p1878_p13 }
  0x49   : > { %1888 = shalt.err (!%p1885_p8)
}
  0x4a   : > { %1707 = dma.hbm_to_vmem [thread:$0]  (!%p2095_p11), %s2091_s27, 256, %s2093_s29, %s2099_s4, %s1963_s5, %s1963_s5, %s1964_s6  }
  0x4b   : > { %p2344_p0 = scmp.ne.s32.totalorder %s2339_s20, 0 }
  0x4c   : > { %s2126_s7 = sand.u32 (!%p2344_p0), 1, %s1949_s13   ;;  %p2345_p4 = scmp.ne.s32.totalorder (!%p2344_p0), %s2337_s18, 0 }
  0x4d   : > { %181 = sbr.rel (%p2344_p0) target bundleno = 1939 (0x793), region = 32  ;;  %s1456_s8 = sshll.u32 (!%p2344_p0), %s2126_s7, 4 }
  0x4e   : > { %s184_s10 = scalar_lea.sflag (!%p2344_p0), [#allocation3], %s2126_s7  ;;  %s2132_s30 = scalar_lea.vmem (!%p2344_p0), [#allocation2], %s1456_s8 }
  0x52   : > { %1932 = dma.done.wait (%p2345_p4), %s184_s10, 256  }
  0x53   : > { %1934 = vsyncadd (%p2345_p4), %s184_s10, 4294967040  ;;  %p2346_p8 = scmp.eq.s32.totalorder %s2014_s16, 0 }
  0x55   : > { %1936 = dma.done.wait (%p2346_p8), [#allocation6], 8192   ;;  %p2347_p7 = pmov %p2346_p8 }
  0x56   : > { %v1966_v0 = vmov 0.0   ;;  %v266_v1 = vld [vmem:[#allocation5 + $0x170] sm:$0xff]  ;;  %v265_v2 = vld [vmem:[#allocation5 + $0x168] sm:$0xff]  ;;  %v263_v3 = vld [vmem:[#allocation5 + $0x158] sm:$0xff]  ;;  %vm422_vm0 = vcmask 261120   ;;  %s1967_s18 = smov 96  }
  0x57   : > { %1938 = vsyncadd (%p2347_p7), [#allocation6], 4294959104  ;;  %332 = vmatprep.mubr.f32.mxu0 %v1966_v0  ;;  %268 = vmatprep.subr.mxu0 %v266_v1  ;;  %v262_v4 = vld [vmem:[#allocation5 + $0x150] sm:$0xff]  ;;  %v260_v5 = vld [vmem:[#allocation5 + $0x140] sm:$0xff]  ;;  %s1968_s20 = smov 64   ;;  %vm510_vm1 = vcmask 130048  }
  0x58   : > { %269 = vmatpush1.msra.mxu0 %v265_v2  ;;  %v259_v6 = vld [vmem:[#allocation5 + $0x138] sm:$0xff]  ;;  %v257_v7 = vld [vmem:[#allocation5 + $0x128] sm:$0xff]  ;;  %v256_v8 = vld [vmem:[#allocation5 + $0x120] sm:$0xff]  ;;  %s1969_s5 = smov 32   ;;  %vm1242_vm2 = vcmask 523264   ;;  %vm1245_vm3 = vcmask 785408  }
  0x59   : > { %270 = vmatprep.subr.mxu0 %v263_v3  ;;  %v254_v9 = vld [vmem:[#allocation5 + $0x110] sm:$0xff]  ;;  %v253_v10 = vld [vmem:[#allocation5 + $0x108] sm:$0xff]  ;;  %v251_v11 = vld [vmem:[#allocation5 + $0xf8] sm:$0xff]  ;;  %s217_s6 = scalar_lea.vmem [#allocation8], %s1456_s8  ;;  %s1490_s29 = sshll.u32 %s2014_s16, 8 }
  0x5a   : > { %271 = vmatpush1.msra.mxu0 %v262_v4  ;;  %v250_v12 = vld [vmem:[#allocation5 + $0xf0] sm:$0xff]  ;;  %v248_v13 = vld [vmem:[#allocation5 + $0xe0] sm:$0xff]  ;;  %v247_v15 = vld [vmem:[#allocation5 + $0xd8] sm:$0xff]  ;;  %s1355_s27 = sshll.u32 %s217_s6, 4  ;;  %s2286_s23 = scalar_lea.hbm %s2332_s3, %s1490_s29  ;;  %s2281_s27 = int_to_ptr.vmem [resolvable:$true] %s1355_s27 }
  0x5b   : > { %272 = vmatprep.subr.mxu0 %v260_v5  ;;  %v2144_v14 = vld [vmem:[%s2132_s30] sm:$0xff]  ;;  %v267_v16 = vld [vmem:[#allocation5 + $0x178] sm:$0xff]  ;;  %v245_v18 = vld [vmem:[#allocation5 + $0xc8] sm:$0xff]  ;;  %s1342_s24 = scalar_lea.sflag [#allocation4], %s2126_s7  ;;  %s1889_s22 = scalar_lea.vmem %s2281_s27, 256 }
  0x5c   : > { %273 = vmatpush1.msra.mxu0 %v259_v6  ;;  %v264_v17 = vld [vmem:[#allocation5 + $0x160] sm:$0xff]  ;;  %1591 = vmatprep.mubr.f32.mxu1 %v2144_v14  ;;  %v261_v20 = vld [vmem:[#allocation5 + $0x148] sm:$0xff]  ;;  %v242_v21 = vld [vmem:[#allocation5 + $0xb0] sm:$0xff]  ;;  %p1890_p11 = scmp.ne.s32.totalorder %s2281_s27, %s1889_s22  ;;  %p2348_p10 = scmp.ne.s32.totalorder %s2342_s21, 0 }
  0x5d   : > { %274 = vmatprep.subr.mxu0 %v257_v7  ;;  %1559 = vmatprep.subr.mxu1 %v267_v16  ;;  %v244_v19 = vld [vmem:[#allocation5 + $0xc0] sm:$0xff]  ;;  %v241_v22 = vld [vmem:[#allocation5 + $0xa8] sm:$0xff]  ;;  %v258_v23 = vld [vmem:[#allocation5 + $0x130] sm:$0xff]  ;;  %s1970_s16 = smov [#allocation8]  }
  0x5e   : > { %275 = vmatpush1.msra.mxu0 %v256_v8  ;;  %1560 = vmatpush3.msra.mxu1 %v267_v16  ;;  %v239_v24 = vld [vmem:[#allocation5 + $0x98] sm:$0xff]  ;;  %v238_v25 = vld [vmem:[#allocation5 + $0x90] sm:$0xff]  ;;  %v236_v27 = vld [vmem:[#allocation5 + $0x80] sm:$0xff]  ;;  %p1891_p1 = pnand %p1890_p11, %p2348_p10  ;;  %s1893_s25 = sshll.u32 %s1970_s16, 4  ;;  %s1894_s25 = int_to_ptr.vmem [resolvable:$false] %s1893_s25 }
  0x5f   : > { %276 = vmatprep.subr.mxu0 %v254_v9  ;;  %1561 = vmatprep.subr.mxu1 %v264_v17  ;;  %v255_v26 = vld [vmem:[#allocation5 + $0x118] sm:$0xff]  ;;  %v252_v29 = vld [vmem:[#allocation5 + $0x100] sm:$0xff]  ;;  %v233_v30 = vld [vmem:[#allocation5 + $0x68] sm:$0xff]  ;;  %s1895_s26 = scalar_lea.vmem %s1894_s25, 512  ;;  %p1896_p6 = scmp.lt.s32.totalorder %s2281_s27, %s1894_s25 }
  0x60   : > { %277 = vmatpush1.msra.mxu0 %v253_v10  ;;  %1562 = vmatpush3.msra.mxu1 %v264_v17  ;;  %v235_v28 = vld [vmem:[#allocation5 + $0x78] sm:$0xff]  ;;  %v232_v31 = vld [vmem:[#allocation5 + $0x60] sm:$0xff]  ;;  %v249_v32 = vld [vmem:[#allocation5 + $0xe8] sm:$0xff]  ;;  %p1892_p2 = pneg %p1891_p1  ;;  %p1897_p12 = scmp.lt.s32.totalorder %s1895_s26, %s1889_s22 }
  0x61   : > { %278 = vmatprep.subr.mxu0 %v251_v11  ;;  %1563 = vmatprep.subr.mxu1 %v261_v20  ;;  %v230_v33 = vld [vmem:[#allocation5 + $0x50] sm:$0xff]  ;;  %v229_v34 = vld [vmem:[#allocation5 + $0x48] sm:$0xff]  ;;  %v227_v36 = vld [vmem:[#allocation5 + $0x38] sm:$0xff] }
  0x62   : > { %279 = vmatpush1.msra.mxu0 %v250_v12  ;;  %1564 = vmatpush3.msra.mxu1 %v261_v20  ;;  %v246_v35 = vld [vmem:[#allocation5 + $0xd0] sm:$0xff]  ;;  %v243_v38 = vld [vmem:[#allocation5 + $0xb8] sm:$0xff]  ;;  %v224_v39 = vld [vmem:[#allocation5 + $0x20] sm:$0xff]  ;;  %p1898_p3 = por %p1897_p12, %p1896_p6 }
  0x63   : > { %280 = vmatprep.subr.mxu0 %v248_v13  ;;  %1565 = vmatprep.subr.mxu1 %v258_v23  ;;  %v226_v37 = vld [vmem:[#allocation5 + $0x30] sm:$0xff]  ;;  %v223_v40 = vld [vmem:[#allocation5 + $0x18] sm:$0xff]  ;;  %v240_v41 = vld [vmem:[#allocation5 + $0xa0] sm:$0xff] }
  0x64   : > { %281 = vmatpush1.msra.mxu0 %v247_v15  ;;  %1566 = vmatpush3.msra.mxu1 %v258_v23  ;;  %v221_v42 = vld [vmem:[#allocation5 + $0x8] sm:$0xff]  ;;  %v220_v43 = vld [vmem:[#allocation5] sm:$0xff]  ;;  %v234_v45 = vld [vmem:[#allocation5 + $0x70] sm:$0xff]  ;;  %p1899_p9 = pnand %p1898_p3, %p1892_p2 }
  0x65   : > { %282 = vmatprep.subr.mxu0 %v245_v18  ;;  %1567 = vmatprep.subr.mxu1 %v255_v26  ;;  %v237_v44 = vld [vmem:[#allocation5 + $0x88] sm:$0xff]  ;;  %v231_v46 = vld [vmem:[#allocation5 + $0x58] sm:$0xff]  ;;  %v228_v48 = vld [vmem:[#allocation5 + $0x40] sm:$0xff] }
  0x66   : > { %283 = vmatpush1.msra.mxu0 %v244_v19  ;;  %1568 = vmatpush3.msra.mxu1 %v255_v26  ;;  %v219_v47 = vld [vmem:[%s2132_s30 + $0x8] sm:$0xff]  ;;  %v222_v50 = vld [vmem:[#allocation5 + $0x10] sm:$0xff] }
  0x67   : > { %284 = vmatprep.subr.mxu0 %v242_v21  ;;  %1569 = vmatprep.subr.mxu1 %v252_v29  ;;  %v225_v49 = vld [vmem:[#allocation5 + $0x28] sm:$0xff] }
  0x68   : > { %285 = vmatpush1.msra.mxu0 %v241_v22  ;;  %1570 = vmatpush3.msra.mxu1 %v252_v29 }
  0x69   : > { %286 = vmatprep.subr.mxu0 %v239_v24  ;;  %1571 = vmatprep.subr.mxu1 %v249_v32 }
  0x6a   : > { %287 = vmatpush1.msra.mxu0 %v238_v25  ;;  %1572 = vmatpush3.msra.mxu1 %v249_v32 }
  0x6b   : > { %288 = vmatprep.subr.mxu0 %v236_v27  ;;  %1573 = vmatprep.subr.mxu1 %v246_v35 }
  0x6c   : > { %289 = vmatpush1.msra.mxu0 %v235_v28  ;;  %1574 = vmatpush3.msra.mxu1 %v246_v35 }
  0x6d   : > { %290 = vmatprep.subr.mxu0 %v233_v30  ;;  %1575 = vmatprep.subr.mxu1 %v243_v38 }
  0x6e   : > { %291 = vmatpush1.msra.mxu0 %v232_v31  ;;  %1576 = vmatpush3.msra.mxu1 %v243_v38 }
  0x6f   : > { %292 = vmatprep.subr.mxu0 %v230_v33  ;;  %1577 = vmatprep.subr.mxu1 %v240_v41 }
  0x70   : > { %293 = vmatpush1.msra.mxu0 %v229_v34  ;;  %1578 = vmatpush3.msra.mxu1 %v240_v41 }
  0x71   : > { %294 = vmatprep.subr.mxu0 %v227_v36  ;;  %1579 = vmatprep.subr.mxu1 %v237_v44 }
  0x72   : > { %295 = vmatpush1.msra.mxu0 %v226_v37  ;;  %1580 = vmatpush3.msra.mxu1 %v237_v44 }
  0x73   : > { %296 = vmatprep.subr.mxu0 %v224_v39  ;;  %1581 = vmatprep.subr.mxu1 %v234_v45 }
  0x74   : > { %297 = vmatpush1.msra.mxu0 %v223_v40  ;;  %1582 = vmatpush3.msra.mxu1 %v234_v45 }
  0x75   : > { %298 = vmatprep.subr.mxu0 %v221_v42  ;;  %1583 = vmatprep.subr.mxu1 %v231_v46 }
  0x76   : > { %299 = vmatpush1.msra.mxu0 %v220_v43  ;;  %1584 = vmatpush3.msra.mxu1 %v231_v46 }
  0x77   : > { %333 = vmatmul.mubr.f32.vlgmr.msra.gmra.mxu0 %v2144_v14  ;;  %1585 = vmatprep.subr.mxu1 %v228_v48 }
  0x78   : > { %338 = vmatprep.mubr.f32.mxu0 %v1966_v0  ;;  %1586 = vmatpush3.msra.mxu1 %v228_v48 }
  0x79   : > { %1587 = vmatprep.subr.mxu1 %v225_v49 }
  0x7a   : > { %1588 = vmatpush3.msra.mxu1 %v225_v49 }
  0x7b   : > { %339 = vmatmul.mubr.f32.gmra.mxu0 %v219_v47  ;;  %1589 = vmatprep.subr.mxu1 %v222_v50 }
  0x7c   : > { %1590 = vmatpush3.msra.mxu1 %v222_v50 }
  0x7d   : > { %1592 = vmatmul.mubr.f32.vlgmr.msra.gmra.mxu1 %v219_v47 }
 0x137   : > { %v334_v51 = vpop.f32.mrf.mxu0 }
 0x138   : > { %v2150_v52 = vmul.f32 5.656854, %v334_v51 }
 0x139   : > { %v2152_v53 = vpop.f32.mrf.mxu0 }
 0x13a   : > { %1598 = vmatprep.mubr.msk.f32.mxu1 %vm422_vm0, %v2150_v52 }
 0x13b   : > { %v340_v54 = vpop.f32.mrf.mxu0 }
 0x13c   : > { %v2172_v57 = vmul.f32 5.656854, %v340_v54 }
 0x13d   : > { %v2156_v55 = vpop.f32.mrf.mxu0  ;;  %v2168_v56 = vpop.f32.mrf.mxu1 }
 0x13e   : > { %620 = vrot.lane.b32.xlu1 %v2156_v55, %s1967_s18  ;;  %1594 = vmatprep.subr.msk.mxu1 %vm422_vm0, %v2156_v55 }
 0x13f   : > { %1595 = vmatpush3.xpose.msk.msra.mxu1 %vm422_vm0, %v2156_v55  ;;  %v2175_v58 = vpop.f32.mrf.mxu1 }
 0x140   : > { %1596 = vmatprep.subr.msk.mxu1 %vm422_vm0, %v2152_v53 }
 0x142   : > { %618 = vrot.lane.b32.xlu1 %v2152_v53, %s1967_s18 }
 0x143   : > { %1597 = vmatpush3.xpose.msk.msra.mxu1 %vm422_vm0, %v2152_v53 }
 0x144   : > { %1601 = vmatprep.subr.mxu1 %v2168_v56 }
 0x146   : > { %822 = vrot.lane.b32.xlu1 %v2156_v55, %s1968_s20  ;;  %1599 = vmatmul.mubr.msk.f32.vlgmr.msra.gmra.mxu1 %vm422_vm0, %v2172_v57 }
 0x147   : > { %1602 = vmatpush3.msra.mxu1 %v2168_v56 }
 0x148   : > { %1603 = vmatprep.subr.mxu1 %v2175_v58 }
 0x149   : > { %1604 = vmatpush3.msra.mxu1 %v2175_v58 }
 0x14a   : > { %616 = vrot.lane.b32.xlu1 %v2172_v57, %s1967_s18 }
 0x14e   : > { %820 = vrot.lane.b32.xlu1 %v2152_v53, %s1968_s20 }
 0x152   : > { %816 = vrot.lane.b32.xlu1 %v2150_v52, %s1968_s20 }
 0x156   : > { %818 = vrot.lane.b32.xlu1 %v2172_v57, %s1968_s20 }
 0x15a   : > { %927 = vrot.lane.b32.xlu1 %v2175_v58, %s1968_s20 }
 0x1b0   : > { %v621_v59 = vpop.permute.xlu1 %620 }
 0x1b1   : > { %1608 = vmatprep.subr.msk.mxu1 %vm422_vm0, %v621_v59 }
 0x1b4   : > { %v619_v5 = vpop.permute.xlu1 %618 }
 0x1b8   : > { %v823_v7 = vpop.permute.xlu1 %822 }
 0x1bc   : > { %v617_v9 = vpop.permute.xlu1 %616 }
 0x1c0   : > { %v821_v12 = vpop.permute.xlu1 %820 }
 0x1c4   : > { %v817_v13 = vpop.permute.xlu1 %816 }
 0x1c8   : > { %v819_v14 = vpop.permute.xlu1 %818 }
 0x1cc   : > { %v928_v25 = vpop.permute.xlu1 %927 }
 0x206   : > { %v1600_v60 = vpop.f32.mrf.mxu1 }
 0x207   : > { %v514_v63 = vsel %vm510_vm1, %v1600_v60, -inf }
 0x208   : > { %v501_v61 = vpop.f32.mrf.mxu1 }
 0x209   : > { %v511_v62 = vsel %vm510_vm1, %v501_v61, -inf }
 0x20a   : > { %512 = vmax.xlane.f32.xlu0 %v511_v62 }
 0x20e   : > { %515 = vmax.xlane.f32.xlu0 %v514_v63 }
 0x224   : > { %614 = vrot.lane.b32.xlu0 %v2150_v52, %s1967_s18 }
 0x293   : > { %v513_v0 = vpop.xlane.xlu0 %512 }
 0x294   : > { %v517_v1 = vsub.f32 %v501_v61, %v513_v0 }
 0x296   : > { %v519_v2 = vmul.f32 1.442695, %v517_v1 }
 0x297   : > { %v516_v3 = vpop.xlane.xlu0 %515 }
 0x298   : > { %1777 = vpow2.f32 %v519_v2  ;;  %v518_v4 = vsub.f32 %v1600_v60, %v516_v3 }
 0x29a   : > { %v521_v6 = vmul.f32 1.442695, %v518_v4 }
 0x29b   : > { %v615_v11 = vpop.permute.xlu0 %614 }
 0x29c   : > { %1779 = vpow2.f32 %v521_v6 }
 0x2a5   : > { %v2199_v8 = vpop.eup %1777 }
 0x2a6   : > { %1605 = vmatprep.mubr.msk.f32.mxu1 %vm510_vm1, %v2199_v8 }
 0x2a9   : > { %v2203_v10 = vpop.eup %1779 }
 0x2aa   : > { %1606 = vmatmul.mubr.msk.f32.vlgmr.msra.gmra.mxu1 %vm510_vm1, %v2203_v10 }
 0x2ab   : > { %1609 = vmatpush3.xpose.msk.msra.mxu1 %vm422_vm0, %v621_v59  ;;  %1612 = vmatprep.mubr.msk.f32.mxu1 %vm422_vm0, %v615_v11 }
 0x2ac   : > { %1610 = vmatprep.subr.msk.mxu1 %vm422_vm0, %v619_v5 }
 0x2af   : > { %1611 = vmatpush3.xpose.msk.msra.mxu1 %vm422_vm0, %v619_v5 }
 0x2b0   : > { %1622 = vmatprep.subr.msk.mxu1 %vm422_vm0, %v823_v7 }
 0x2b2   : > { %1613 = vmatmul.mubr.msk.f32.vlgmr.msra.gmra.mxu1 %vm422_vm0, %v617_v9  ;;  %v523_v9 = vsel %vm510_vm1, %v2199_v8, 0.0 }
 0x2b3   : > { %1623 = vmatpush3.xpose.msk.msra.mxu1 %vm422_vm0, %v823_v7  ;;  %1626 = vmatprep.mubr.msk.f32.mxu1 %vm422_vm0, %v817_v13  ;;  %v526_v7 = vsel %vm510_vm1, %v2203_v10, 0.0 }
 0x2b4   : > { %1624 = vmatprep.subr.msk.mxu1 %vm422_vm0, %v821_v12 }
 0x2b7   : > { %1625 = vmatpush3.xpose.msk.msra.mxu1 %vm422_vm0, %v821_v12 }
 0x2ba   : > { %1627 = vmatmul.mubr.msk.f32.vlgmr.msra.gmra.mxu1 %vm422_vm0, %v819_v14 }
 0x36a   : > { %v2218_v15 = vpop.f32.mrf.mxu1 }
 0x36c   : > { %v2220_v16 = vpop.f32.mrf.mxu1 }
 0x372   : > { %v1614_v17 = vpop.f32.mrf.mxu1 }
 0x373   : > { %v708_v24 = vsel %vm510_vm1, %v1614_v17, -inf }
 0x374   : > { %v696_v18 = vpop.f32.mrf.mxu1 }
 0x375   : > { %v705_v23 = vsel %vm510_vm1, %v696_v18, -inf }
 0x37a   : > { %v1628_v19 = vpop.f32.mrf.mxu1 }
 0x37b   : > { %v910_v20 = vsel %vm510_vm1, %v1628_v19, -inf }
 0x37c   : > { %911 = vmax.xlane.f32.xlu0 %v910_v20  ;;  %v898_v21 = vpop.f32.mrf.mxu1 }
 0x37d   : > { %v907_v22 = vsel %vm510_vm1, %v898_v21, -inf }
 0x37e   : > { %908 = vmax.xlane.f32.xlu1 %v907_v22 }
 0x38f   : > { %1022 = vrot.lane.b32.xlu1 %v2156_v55, %s1969_s5 }
 0x392   : > { %929 = vrot.lane.b32.xlu0 %v2168_v56, %s1968_s20 }
 0x393   : > { %1016 = vrot.lane.b32.xlu1 %v2150_v52, %s1969_s5 }
 0x396   : > { %1020 = vrot.lane.b32.xlu0 %v2152_v53, %s1969_s5 }
 0x39a   : > { %1018 = vrot.lane.b32.xlu0 %v2172_v57, %s1969_s5 }
 0x3b7   : > { %706 = vmax.xlane.f32.xlu1 %v705_v23 }
 0x3b9   : > { %709 = vmax.xlane.f32.xlu0 %v708_v24 }
 0x3c8   : > { %727 = vrot.lane.b32.xlu1 %v2175_v58, %s1967_s18 }
 0x3cf   : > { %729 = vrot.lane.b32.xlu0 %v2168_v56, %s1967_s18 }
 0x405   : > { %v912_v26 = vpop.xlane.xlu0 %911 }
 0x406   : > { %v914_v27 = vsub.f32 %v1628_v19, %v912_v26 }
 0x407   : > { %v909_v28 = vpop.xlane.xlu1 %908 }
 0x408   : > { %v913_v29 = vsub.f32 %v898_v21, %v909_v28  ;;  %v917_v30 = vmul.f32 1.442695, %v914_v27  ;;  %v1263_v27 = vld [vmem:[#allocation7 + $0x78] sm:$0xff]  ;;  %v1262_v28 = vld [vmem:[#allocation7 + $0x70] sm:$0xff] }
 0x409   : > { %v930_v31 = vpop.permute.xlu0 %929 }
 0x40a   : > { %v915_v32 = vmul.f32 1.442695, %v913_v29  ;;  %1629 = vmatprep.subr.mxu1 %v930_v31  ;;  %v1261_v29 = vld [vmem:[#allocation7 + $0x68] sm:$0xff] }
 0x40b   : > { %1630 = vmatpush3.msra.mxu1 %v930_v31  ;;  %v1023_v33 = vpop.permute.xlu1 %1022  ;;  %v1259_v31 = vld [vmem:[#allocation7 + $0x58] sm:$0xff] }
 0x40c   : > { %1781 = vpow2.f32 %v915_v32  ;;  %1631 = vmatprep.subr.mxu1 %v928_v25  ;;  %v1258_v32 = vld [vmem:[#allocation7 + $0x50] sm:$0xff] }
 0x40d   : > { %1783 = vpow2.f32 %v917_v30  ;;  %1632 = vmatpush3.msra.mxu1 %v928_v25  ;;  %v1021_v37 = vpop.permute.xlu0 %1020  ;;  %v1260_v30 = vld [vmem:[#allocation7 + $0x60] sm:$0xff] }
 0x40e   : > { %1636 = vmatprep.subr.msk.mxu1 %vm422_vm0, %v1023_v33 }
 0x40f   : > { %v1017_v36 = vpop.permute.xlu1 %1016 }
 0x411   : > { %v1019_v38 = vpop.permute.xlu0 %1018 }
 0x419   : > { %v1782_v34 = vpop.eup %1781 }
 0x41a   : > { %v1784_v35 = vpop.eup %1783  ;;  %1633 = vmatprep.mubr.msk.f32.mxu1 %vm510_vm1, %v1782_v34  ;;  %v919_v60 = vsel %vm510_vm1, %v1782_v34, 0.0  ;;  %v1256_v34 = vld [vmem:[#allocation7 + $0x40] sm:$0xff] }
 0x41b   : > { %1634 = vmatmul.mubr.msk.f32.vlgmr.msra.gmra.mxu1 %vm510_vm1, %v1784_v35  ;;  %v922_v59 = vsel %vm510_vm1, %v1784_v35, 0.0  ;;  %v1255_v35 = vld [vmem:[#allocation7 + $0x38] sm:$0xff] }
 0x41c   : > { %1637 = vmatpush3.xpose.msk.msra.mxu1 %vm422_vm0, %v1023_v33  ;;  %1640 = vmatprep.mubr.msk.f32.mxu1 %vm422_vm0, %v1017_v36  ;;  %v1257_v33 = vld [vmem:[#allocation7 + $0x48] sm:$0xff]  ;;  %v1254_v36 = vld [vmem:[#allocation7 + $0x30] sm:$0xff] }
 0x41d   : > { %1638 = vmatprep.subr.msk.mxu1 %vm422_vm0, %v1021_v37 }
 0x420   : > { %1639 = vmatpush3.xpose.msk.msra.mxu1 %vm422_vm0, %v1021_v37  ;;  %v1253_v37 = vld [vmem:[#allocation7 + $0x28] sm:$0xff] }
 0x423   : > { %1641 = vmatmul.mubr.msk.f32.vlgmr.msra.gmra.mxu1 %vm422_vm0, %v1019_v38  ;;  %v1252_v38 = vld [vmem:[#allocation7 + $0x20] sm:$0xff] }
 0x440   : > { %v707_v39 = vpop.xlane.xlu1 %706 }
 0x441   : > { %v711_v40 = vsub.f32 %v696_v18, %v707_v39  ;;  %v1251_v39 = vld [vmem:[#allocation7 + $0x18] sm:$0xff] }
 0x442   : > { %v710_v41 = vpop.xlane.xlu0 %709 }
 0x443   : > { %v713_v42 = vmul.f32 1.442695, %v711_v40  ;;  %v712_v43 = vsub.f32 %v1614_v17, %v710_v41  ;;  %v1250_v40 = vld [vmem:[#allocation7 + $0x10] sm:$0xff] }
 0x444   : > { %v728_v46 = vpop.permute.xlu1 %727 }
 0x445   : > { %1785 = vpow2.f32 %v713_v42  ;;  %v715_v44 = vmul.f32 1.442695, %v712_v43  ;;  %v1249_v43 = vld [vmem:[#allocation7 + $0x8] sm:$0xff] }
 0x446   : > { %v730_v45 = vpop.permute.xlu0 %729 }
 0x447   : > { %1787 = vpow2.f32 %v715_v44  ;;  %1615 = vmatprep.subr.mxu0 %v730_v45  ;;  %v1248_v44 = vld [vmem:[#allocation7] sm:$0xff] }
 0x448   : > { %1616 = vmatpush3.msra.mxu0 %v730_v45 }
 0x449   : > { %1617 = vmatprep.subr.mxu0 %v728_v46 }
 0x44a   : > { %1618 = vmatpush3.msra.mxu0 %v728_v46 }
 0x452   : > { %v1786_v47 = vpop.eup %1785 }
 0x453   : > { %1619 = vmatprep.mubr.msk.f32.mxu0 %vm510_vm1, %v1786_v47  ;;  %v717_v55 = vsel %vm510_vm1, %v1786_v47, 0.0 }
 0x454   : > { %v1788_v48 = vpop.eup %1787 }
 0x455   : > { %1620 = vmatmul.mubr.msk.f32.vlgmr.msra.gmra.mxu0 %vm510_vm1, %v1788_v48  ;;  %v720_v57 = vsel %vm510_vm1, %v1788_v48, 0.0 }
 0x4db   : > { %v2250_v49 = vpop.f32.mrf.mxu1 }
 0x4dd   : > { %v1005_v50 = vpop.f32.mrf.mxu1 }
 0x4e3   : > { %v1642_v51 = vpop.f32.mrf.mxu1 }
 0x4e4   : > { %v1110_v52 = vsel %vm510_vm1, %v1642_v51, -inf }
 0x4e5   : > { %v1098_v53 = vpop.f32.mrf.mxu1  ;;  %1111 = vmax.xlane.f32.xlu1 %v1110_v52 }
 0x4e6   : > { %v1107_v54 = vsel %vm510_vm1, %v1098_v53, -inf }
 0x4e7   : > { %1108 = vmax.xlane.f32.xlu0 %v1107_v54 }
 0x4f6   : > { %1129 = vrot.lane.b32.xlu1 %v2168_v56, %s1969_s5 }
 0x4fd   : > { %1127 = vrot.lane.b32.xlu0 %v2175_v58, %s1969_s5 }
 0x515   : > { %v1621_v17 = vpop.f32.mrf.mxu0 }
 0x517   : > { %v805_v20 = vpop.f32.mrf.mxu0 }
 0x51a   : > { %718 = vadd.xlane.f32.xlu1 %v717_v55 }
 0x51c   : > { %721 = vadd.xlane.f32.xlu0 %v720_v57 }
 0x51e   : > { %923 = vadd.xlane.f32.xlu1 %v922_v59 }
 0x520   : > { %920 = vadd.xlane.f32.xlu0 %v919_v60 }
 0x56e   : > { %v1112_v61 = vpop.xlane.xlu1 %1111 }
 0x56f   : > { %v1114_v62 = vsub.f32 %v1642_v51, %v1112_v61 }
 0x570   : > { %v1109_v63 = vpop.xlane.xlu0 %1108 }
 0x571   : > { %v1117_v0 = vmul.f32 1.442695, %v1114_v62  ;;  %v1113_v56 = vsub.f32 %v1098_v53, %v1109_v63 }
 0x572   : > { %v1130_v1 = vpop.permute.xlu1 %1129 }
 0x573   : > { %1789 = vpow2.f32 %v1117_v0  ;;  %v1115_v58 = vmul.f32 1.442695, %v1113_v56  ;;  %1643 = vmatprep.subr.mxu0 %v1130_v1 }
 0x574   : > { %v1128_v2 = vpop.permute.xlu0 %1127  ;;  %1644 = vmatpush3.msra.mxu0 %v1130_v1 }
 0x575   : > { %1791 = vpow2.f32 %v1115_v58  ;;  %1645 = vmatprep.subr.mxu0 %v1128_v2 }
 0x576   : > { %1646 = vmatpush3.msra.mxu0 %v1128_v2 }
 0x577   : > { %1650 = vmatprep.subr.mxu0 %v1263_v27 }
 0x580   : > { %v1790_v3 = vpop.eup %1789 }
 0x581   : > { %v1122_v4 = vsel %vm510_vm1, %v1790_v3, 0.0 }
 0x582   : > { %v1792_v5 = vpop.eup %1791  ;;  %1123 = vadd.xlane.f32.xlu1 %v1122_v4 }
 0x583   : > { %1647 = vmatprep.mubr.msk.f32.mxu0 %vm510_vm1, %v1792_v5  ;;  %v1119_v6 = vsel %vm510_vm1, %v1792_v5, 0.0 }
 0x584   : > { %1120 = vadd.xlane.f32.xlu0 %v1119_v6  ;;  %1648 = vmatmul.mubr.msk.f32.vlgmr.msra.gmra.mxu0 %vm510_vm1, %v1790_v3 }
 0x585   : > { %1651 = vmatpush3.msra.mxu0 %v1263_v27 }
 0x586   : > { %527 = vadd.xlane.f32.xlu1 %v526_v7  ;;  %1652 = vmatprep.subr.mxu0 %v1262_v28 }
 0x587   : > { %1653 = vmatpush3.msra.mxu0 %v1262_v28 }
 0x588   : > { %524 = vadd.xlane.f32.xlu0 %v523_v9  ;;  %1654 = vmatprep.subr.mxu0 %v1261_v29 }
 0x589   : > { %1655 = vmatpush3.msra.mxu0 %v1261_v29 }
 0x58a   : > { %1656 = vmatprep.subr.mxu0 %v1260_v30 }
 0x58b   : > { %1657 = vmatpush3.msra.mxu0 %v1260_v30 }
 0x58c   : > { %1658 = vmatprep.subr.mxu0 %v1259_v31 }
 0x58d   : > { %1659 = vmatpush3.msra.mxu0 %v1259_v31 }
 0x58e   : > { %1660 = vmatprep.subr.mxu0 %v1258_v32 }
 0x58f   : > { %1661 = vmatpush3.msra.mxu0 %v1258_v32 }
 0x590   : > { %1662 = vmatprep.subr.mxu0 %v1257_v33 }
 0x591   : > { %1663 = vmatpush3.msra.mxu0 %v1257_v33 }
 0x592   : > { %1664 = vmatprep.subr.mxu0 %v1256_v34 }
 0x593   : > { %1665 = vmatpush3.msra.mxu0 %v1256_v34 }
 0x594   : > { %1666 = vmatprep.subr.mxu0 %v1255_v35 }
 0x595   : > { %1667 = vmatpush3.msra.mxu0 %v1255_v35 }
 0x596   : > { %1668 = vmatprep.subr.mxu0 %v1254_v36 }
 0x597   : > { %1669 = vmatpush3.msra.mxu0 %v1254_v36 }
 0x598   : > { %1670 = vmatprep.subr.mxu0 %v1253_v37 }
 0x599   : > { %1671 = vmatpush3.msra.mxu0 %v1253_v37 }
 0x59a   : > { %1672 = vmatprep.subr.mxu0 %v1252_v38 }
 0x59b   : > { %1673 = vmatpush3.msra.mxu0 %v1252_v38 }
 0x59c   : > { %1674 = vmatprep.subr.mxu0 %v1251_v39 }
 0x59d   : > { %1675 = vmatpush3.msra.mxu0 %v1251_v39 }
 0x59e   : > { %1676 = vmatprep.subr.mxu0 %v1250_v40 }
 0x59f   : > { %1677 = vmatpush3.msra.mxu0 %v1250_v40 }
 0x5a0   : > { %1678 = vmatprep.subr.mxu0 %v1249_v43 }
 0x5a1   : > { %1679 = vmatpush3.msra.mxu0 %v1249_v43 }
 0x5a2   : > { %1680 = vmatprep.subr.mxu0 %v1248_v44 }
 0x5a3   : > { %v719_v11 = vpop.xlane.xlu1 %718  ;;  %1681 = vmatpush3.msra.mxu0 %v1248_v44 }
 0x5a4   : > { %1793 = vrcp.f32 %v719_v11 }
 0x5a5   : > { %v722_v12 = vpop.xlane.xlu0 %721 }
 0x5a6   : > { %1795 = vrcp.f32 %v722_v12 }
 0x5a7   : > { %v924_v13 = vpop.xlane.xlu1 %923 }
 0x5a8   : > { %1797 = vrcp.f32 %v924_v13 }
 0x5a9   : > { %v921_v14 = vpop.xlane.xlu0 %920 }
 0x5aa   : > { %1799 = vrcp.f32 %v921_v14 }
 0x5b1   : > { %v1794_v18 = vpop.eup %1793 }
 0x5b2   : > { %v814_v21 = vmul.f32 %v1794_v18, %v805_v20 }
 0x5b3   : > { %v1796_v19 = vpop.eup %1795 }
 0x5b4   : > { %v815_v22 = vmul.f32 %v1796_v19, %v1621_v17 }
 0x5b5   : > { %v1798_v10 = vpop.eup %1797 }
 0x5b6   : > { %v1762_v23 = vpack.i.bf16 %v815_v22, %v814_v21  ;;  %v1015_v25 = vmul.f32 %v1798_v10, %v2250_v49 }
 0x5b7   : > { %v1800_v24 = vpop.eup %1799 }
 0x5b8   : > { %1763 = vrot.lane.b32.xlu0 %v1762_v23, %s1969_s5  ;;  %v1014_v8 = vmul.f32 %v1800_v24, %v1005_v50 }
 0x5ba   : > { %v1767_v26 = vpack.i.bf16 %v1015_v25, %v1014_v8 }
 0x5bc   : > { %1768 = vrot.lane.b32.xlu1 %v1767_v26, %s1968_s20 }
 0x60b   : > { %v1124_v41 = vpop.xlane.xlu1 %1123 }
 0x60c   : > { %1801 = vrcp.f32 %v1124_v41 }
 0x60d   : > { %v1121_v42 = vpop.xlane.xlu0 %1120 }
 0x60e   : > { %1803 = vrcp.f32 %v1121_v42 }
 0x60f   : > { %v528_v52 = vpop.xlane.xlu1 %527 }
 0x610   : > { %1805 = vrcp.f32 %v528_v52 }
 0x611   : > { %v525_v53 = vpop.xlane.xlu0 %524 }
 0x612   : > { %1807 = vrcp.f32 %v525_v53 }
 0x619   : > { %v1802_v46 = vpop.eup %1801 }
 0x61b   : > { %v1804_v47 = vpop.eup %1803 }
 0x61d   : > { %v1806_v55 = vpop.eup %1805 }
 0x61e   : > { %v613_v56 = vmul.f32 %v1806_v55, %v2218_v15 }
 0x61f   : > { %v1808_v59 = vpop.eup %1807 }
 0x620   : > { %v612_v0 = vmul.f32 %v1808_v59, %v2220_v16 }
 0x62a   : > { %v1764_v54 = vpop.permute.xlu0 %1763 }
 0x62b   : > { %v1766_v60 = vunpack.i.h.bf16 %v1764_v54  ;;  %v1765_v61 = vunpack.i.l.bf16 %v1764_v54 }
 0x62d   : > { %v1240_v58 = vsel %vm422_vm0, %v612_v0, %v1765_v61  ;;  %v1241_v2 = vsel %vm422_vm0, %v613_v56, %v1766_v60 }
 0x62e   : > { %v1769_v57 = vpop.permute.xlu1 %1768 }
 0x62f   : > { %v1771_v62 = vunpack.i.h.bf16 %v1769_v57  ;;  %v1770_v63 = vunpack.i.l.bf16 %v1769_v57 }
 0x631   : > { %v1243_v5 = vsel %vm1242_vm2, %v1240_v58, %v1770_v63  ;;  %v1244_v6 = vsel %vm1242_vm2, %v1241_v2, %v1771_v62 }
 0x644   : > { %v1649_v45 = vpop.f32.mrf.mxu0 }
 0x645   : > { %v1215_v49 = vmul.f32 %v1802_v46, %v1649_v45 }
 0x646   : > { %v1205_v48 = vpop.f32.mrf.mxu0 }
 0x647   : > { %v1214_v50 = vmul.f32 %v1804_v47, %v1205_v48 }
 0x649   : > { %v1772_v51 = vpack.i.bf16 %v1215_v49, %v1214_v50 }
 0x64b   : > { %1773 = vrot.lane.b32.xlu1 %v1772_v51, %s1967_s18 }
 0x6bd   : > { %v1774_v1 = vpop.permute.xlu1 %1773 }
 0x6be   : > { %v1776_v3 = vunpack.i.h.bf16 %v1774_v1  ;;  %v1775_v4 = vunpack.i.l.bf16 %v1774_v1 }
 0x6c0   : > { %v1246_v7 = vsel %vm1245_vm3, %v1243_v5, %v1775_v4  ;;  %v1247_v9 = vsel %vm1245_vm3, %v1244_v6, %v1776_v3 }
 0x6c1   : > { %1682 = vmatprep.mubr.f32.mxu0 %v1246_v7 }
 0x6c2   : > { %1683 = vmatmul.mubr.f32.vlgmr.msra.gmra.mxu0 %v1247_v9 }
 0x782   : > { %v1684_v15 = vpop.f32.mrf.mxu0 }
 0x783   : > { %1340 = vst [vmem:[%s217_s6 + $0x8] sm:$0xff] %v1684_v15 }
 0x784   : > { %v1330_v16 = vpop.f32.mrf.mxu0 }
 0x785   : > { %1339 = vst [vmem:[%s217_s6] sm:$0xff] %v1330_v16 }
 0x786   : > { %1902 = shalt.err (!%p1899_p9)
}
 0x787   : > { %s1903_s28 = scalar_lea.hbm %s2286_s23, 256  ;;  %s1907_s30 = scalar_lea.hbm %s2332_s3, 512 }
 0x788   : > { %p1904_p13 = scmp.ne.s32.totalorder %s2286_s23, %s1903_s28  ;;  %p1908_p4 = scmp.lt.s32.totalorder %s2286_s23, %s2332_s3 }
 0x789   : > { %p1909_p8 = scmp.lt.s32.totalorder %s1907_s30, %s1903_s28 }
 0x78a   : > { %p1905_p5 = pnand %p1904_p13, %p2348_p10 }
 0x78b   : > { %p1910_p7 = por %p1909_p8, %p1908_p4 }
 0x78c   : > { %p1906_p0 = pneg %p1905_p5 }
 0x78e   : > { %p1911_p11 = pnand %p1910_p7, %p1906_p0 }
 0x790   : > { %1914 = shalt.err (!%p1911_p11)
}
 0x791   : > { %s1971_s5 = smov 128   ;;  %s1972_s6 = smov 8  }
 0x792   : > { %1695 = dma.vmem_to_hbm [thread:$0]  (%p2348_p10), %s2281_s27, 256, %s2286_s23, %s1342_s24, %s1971_s5, %s1971_s5, %s1972_s6  }
 0x793 PF: > { %s1370_s29 = sand.u32 1, %s1945_s12   ;;  %p2349_p1 = scmp.ne.s32.totalorder %s2338_s19, 0 }
 0x794   : > { %p2350_p2 = scmp.ge.s32.totalorder %s1957_s15, 2  ;;  %s1371_s4 = scalar_lea.sflag [#allocation4], %s1370_s29 }
 0x796   : > { %p1709_p6 = pnand %p2350_p2, %p2349_p1 }
 0x798   : > { %p1710_p12 = pneg %p1709_p6 }
 0x79a   : > { %1940 = dma.done.wait (%p1710_p12), %s1371_s4, 256  }
 0x79b   : > { %1942 = vsyncadd (%p1710_p12), %s1371_s4, 4294967040  ;;  %p17_p3 = scmp.ge.s32.totalorder %s2068_s9, 4   ;;  %s2351_s12 = smov %s1949_s13 }
 0x79c   : > { %s2352_s13 = smov %s1953_s14  ;;  %s2353_s14 = smov %s2077_s17 }
 0x79d   : > { %s2354_s15 = smov %s2068_s9  ;;  %19 = sbr.rel (!%p17_p3) target bundleno = 6 (0x6), region = 85 }
 0x7a2   :  { %1376 = vsyncpa [#allocation3], 1 }
 0x7a3   :  { %1378 = vsyncpa [#allocation3 + $0x1], 1 }
 0x7a4   :  { %1379 = vsyncpa [#allocation6], 1 }
 0x7a5   :  { %1380 = vsyncpa [#allocation4], 1 }
 0x7a6   :  { %1382 = vsyncpa [#allocation4 + $0x1], 1 }

</bundles_post_ra>
